<compile_context>
chip_gen: v7x
topology: tpu7x:2x2x1
jax: 0.10.0
libtpu: 0.0.40
codegen_flags: <defaults>
</compile_context>

<pallas_src>
import math
from functools import partial

import jax
import jax.numpy as jnp
from jax.experimental import pallas as pl
from jax.experimental.pallas import tpu as pltpu


_LANE = 128
_SUBLANE = 8
_TILE_BYTE_BUDGET = 4 * 1024 * 1024   # per-pipeline-step bytes (x2 for double buffer)
_MAX_TILE_ROWS = 2048
_PALLAS_MIN_ELEMENTS = 1 << 15        # below this, let XLA fuse the op
_MAX_SELECT_BATCHES = 32              # above this, one-hot ids use the MXU path


# ----------------------------- kernels -------------------------------------


def _bcast_kernel(z_ref, style_ref, o_ref):
    # out = z - style_row ; style_ref block is [1, lane], broadcast over rows.
    o_ref[...] = z_ref[...] - style_ref[...].astype(o_ref.dtype)


def _ids_select_kernel(ids_ref, z_ref, style_ref, o_ref):
    # out[r] = z[r] - style[ids[r]] ; per-row select on the VPU (no MXU).
    ids = ids_ref[...]                       # [tb, 1] int32
    n = style_ref.shape[0]
    s = style_ref[0:1, :]                    # [1, D]
    for k in range(1, n):                    # static unroll, n is small
        s = jnp.where(ids == k, style_ref[k:k + 1, :], s)
    o_ref[...] = z_ref[...] - s.astype(o_ref.dtype)


def _mm_kernel(z_ref, batchid_ref, style_ref, o_ref):
    # out = z - batchid @ style ; f32 accumulation on the MXU, native-dtype sub.
    s = jnp.dot(batchid_ref[...], style_ref[...],
                preferred_element_type=jnp.float32)
    o_ref[...] = z_ref[...] - s.astype(o_ref.dtype)


# ----------------------------- helpers --------------------------------------


def _pick_row_tile(rows, bytes_per_row):
    """Largest multiple-of-8 row tile whose per-step bytes fit the budget."""
    tb = _TILE_BYTE_BUDGET // max(1, bytes_per_row)
    tb = min(_MAX_TILE_ROWS, max(_SUBLANE, tb))
    tb = max(_SUBLANE, (tb // _SUBLANE) * _SUBLANE)
    return rows if tb >= rows else tb


def _compiler_params():
    return pltpu.CompilerParams(dimension_semantics=("parallel",))


# ----------------------------- forward paths --------------------------------


def _forward_broadcast(z, style, alias_z):
    """N == 1: out = z - style (broadcast), lane-dense re-layout when possible."""
    B, D = z.shape
    itemsize = z.dtype.itemsize

    out_shape = None
    if D % _LANE == 0:
        z2, s2, rows, lane = z, style.reshape(1, D), B, D
    else:
        lane = None
        for cand in (1024, 512, 256, _LANE):
            if D < cand and cand % D == 0 and (B * D) % cand == 0:
                lane = cand
                break
        if lane is not None:
            rows = (B * D) // lane
            z2 = z.reshape(rows, lane)
            s2 = jnp.tile(style.reshape(-1), lane // D).reshape(1, lane)
            out_shape = (B, D)
        else:
            # Fall back to the natural [B, D] layout (block last dim == full
            # array dim, so still a legal BlockSpec; stores are lane-masked).
            z2, s2, rows, lane = z, style.reshape(1, D), B, D

    tb = _pick_row_tile(rows, 2 * lane * itemsize)
    grid = (pl.cdiv(rows, tb),)
    cost = pl.CostEstimate(
        flops=rows * lane,
        transcendentals=0,
        bytes_accessed=(2 * rows * lane + lane) * itemsize,
    )
    out = pl.pallas_call(
        _bcast_kernel,
        out_shape=jax.ShapeDtypeStruct((rows, lane), z.dtype),
        grid=grid,
        in_specs=[
            pl.BlockSpec((tb, lane), lambda i: (i, 0)),
            pl.BlockSpec((1, lane), lambda i: (0, 0)),
        ],
        out_specs=pl.BlockSpec((tb, lane), lambda i: (i, 0)),
        compiler_params=_compiler_params(),
        cost_estimate=cost,
        input_output_aliases=({0: 0} if alias_z else {}),
    )(z2, s2)
    return out if out_shape is None else out.reshape(out_shape)


def _forward_ids(z, ids, style, alias_z):
    """Integer ids: out[r] = z[r] - style[ids[r]] via VPU select (no MXU)."""
    B, D = z.shape
    N = style.shape[0]
    itemsize = z.dtype.itemsize
    ids2 = ids.astype(jnp.int32).reshape(B, 1)

    tb = _pick_row_tile(B, 2 * D * itemsize + 4)
    grid = (pl.cdiv(B, tb),)
    cost = pl.CostEstimate(
        flops=B * D * N,  # N selects + subtract, approximate
        transcendentals=0,
        bytes_accessed=2 * B * D * itemsize + N * D * style.dtype.itemsize + B * 4,
    )
    return pl.pallas_call(
        _ids_select_kernel,
        out_shape=jax.ShapeDtypeStruct((B, D), z.dtype),
        grid=grid,
        in_specs=[
            pl.BlockSpec((tb, 1), lambda i: (i, 0)),
            pl.BlockSpec((tb, D), lambda i: (i, 0)),
            pl.BlockSpec((N, D), lambda i: (0, 0)),
        ],
        out_specs=pl.BlockSpec((tb, D), lambda i: (i, 0)),
        compiler_params=_compiler_params(),
        cost_estimate=cost,
        input_output_aliases=({1: 0} if alias_z else {}),
    )(ids2, z, style)


def _forward_matmul(z, batchid, style, alias_z):
    """Dense batchid: out = z - batchid @ style (faithful to torch.mm)."""
    B, D = z.shape
    N = style.shape[0]
    itemsize = z.dtype.itemsize

    tb = _pick_row_tile(B, (2 * D + N) * itemsize)
    grid = (pl.cdiv(B, tb),)
    cost = pl.CostEstimate(
        flops=2 * B * N * D + B * D,
        transcendentals=0,
        bytes_accessed=(2 * B * D + B * N) * itemsize + N * D * style.dtype.itemsize,
    )
    return pl.pallas_call(
        _mm_kernel,
        out_shape=jax.ShapeDtypeStruct((B, D), z.dtype),
        grid=grid,
        in_specs=[
            pl.BlockSpec((tb, D), lambda i: (i, 0)),
            pl.BlockSpec((tb, N), lambda i: (i, 0)),
            pl.BlockSpec((N, D), lambda i: (0, 0)),
        ],
        out_specs=pl.BlockSpec((tb, D), lambda i: (i, 0)),
        compiler_params=_compiler_params(),
        cost_estimate=cost,
        input_output_aliases=({0: 0} if alias_z else {}),
    )(z, batchid, style)


# ----------------------------- public API -----------------------------------


def style_block_forward(z, batchid, style, *, use_pallas=None, alias_z=False):
    """Pallas implementation of StyleBlock.forward.

    z:       [B, D] float
    batchid: [B, N] float (dense / one-hot), OR [B] integer ids (fast path),
             OR None / ignored when num_batches == 1 (matches the torch module).
    style:   [N, D] float parameter
    use_pallas: None = auto (size threshold), True/False = force.
    alias_z: opt-in in-place output (only when z is dead after this op).
    """
    B, D = z.shape
    N = style.shape[0]

    if use_pallas is None:
        use_pallas = (B * D) >= _PALLAS_MIN_ELEMENTS
    if not use_pallas:
        # Tiny problem: kernel-launch + DMA setup dominates; let XLA fuse it.
        if N == 1:
            return z - style
        if batchid is not None and batchid.ndim == 1:
            return z - jnp.take(style, batchid, axis=0)
        return z - jnp.dot(batchid, style)

    if N == 1:
        return _forward_broadcast(z, style, alias_z)

    if (batchid is not None and batchid.ndim == 1
            and jnp.issubdtype(batchid.dtype, jnp.integer)):
        if N <= _MAX_SELECT_BATCHES:
            return _forward_ids(z, batchid, style, alias_z)
        # Many batches: one-hot + MXU matmul beats N VPU selects.
        batchid = jax.nn.one_hot(batchid, N, dtype=z.dtype)

    return _forward_matmul(z, batchid, style, alias_z)


def init_style(key, num_batches, latent_dim, dtype=jnp.float32):
    # Matches nn.init: uniform(-stdv, stdv), stdv = 1/sqrt(latent_dim)
    stdv = 1.0 / math.sqrt(latent_dim)
    return jax.random.uniform(
        key, (num_batches, latent_dim), dtype=dtype, minval=-stdv, maxval=stdv
    )


# ----------------------------- demo -----------------------------------------

if __name__ == "__main__":
    key = jax.random.PRNGKey(0)
    k_style, k_z, k_id, k_style1 = jax.random.split(key, 4)

    batch, num_batches, latent_dim = 8, 4, 32

    style = init_style(k_style, num_batches, latent_dim)
    z = jax.random.normal(k_z, (batch, latent_dim), dtype=jnp.float32)
    ids = jax.random.randint(k_id, (batch,), 0, num_batches)
    batchid = jax.nn.one_hot(ids, num_batches, dtype=jnp.float32)

    # Force the Pallas paths at these tiny demo shapes.
    fwd = partial(style_block_forward, use_pallas=True)

    # 1) dense-matmul path (faithful to torch.mm(batchid, style))
    out_mm = jax.block_until_ready(fwd(z, batchid, style))
    ref_mm = z - batchid @ style
    assert out_mm.shape == (batch, latent_dim)
    assert jnp.allclose(out_mm, ref_mm, atol=1e-5, rtol=1e-5)

    # 2) integer-id fast path (one-hot case, VPU select, no MXU)
    out_ids = jax.block_until_ready(fwd(z, ids, style))
    ref_ids = z - style[ids]
    assert jnp.allclose(out_ids, ref_ids, atol=1e-5, rtol=1e-5)
    assert jnp.allclose(out_ids, ref_mm, atol=1e-5, rtol=1e-5)

    # 3) num_batches == 1 broadcast path (lane-dense re-layout)
    style1 = init_style(k_style1, 1, latent_dim)
    out1 = jax.block_until_ready(fwd(z, None, style1))
    ref1 = z - style1
    assert jnp.allclose(out1, ref1, atol=1e-5, rtol=1e-5)

    print("KERNEL_OK")
</pallas_src>

<mosaic_0001>
module attributes {stable_mosaic.version = 11 : i64} {
  func.func @_mm_kernel(%arg0: i32, %arg1: memref<8x32xf32, #tpu.memory_space<vmem>>, %arg2: memref<8x4xf32, #tpu.memory_space<vmem>>, %arg3: memref<4x32xf32, #tpu.memory_space<vmem>>, %arg4: memref<8x32xf32, #tpu.memory_space<vmem>>) attributes {dimension_semantics = [#tpu.dimension_semantics<parallel>], iteration_bounds = array<i64: 1>, scalar_prefetch = 0 : i64, scratch_operands = 0 : i64, tpu.core_type = #tpu.core_type<tc>, window_params = [{transform_indices = @transform_0, window_bounds = array<i64: 8, 32>}, {transform_indices = @transform_1, window_bounds = array<i64: 8, 4>}, {pipeline_mode = #tpu.pipeline_mode<synchronous>, transform_indices = @transform_2, window_bounds = array<i64: 4, 32>}, {transform_indices = @transform_3, window_bounds = array<i64: 8, 32>}]} {
    %c0 = arith.constant 0 : index
    %c0_0 = arith.constant 0 : index
    %0 = vector.load %arg2[%c0, %c0_0] : memref<8x4xf32, #tpu.memory_space<vmem>>, vector<8x4xf32>
    %c0_1 = arith.constant 0 : index
    %c0_2 = arith.constant 0 : index
    %1 = vector.load %arg3[%c0_1, %c0_2] : memref<4x32xf32, #tpu.memory_space<vmem>>, vector<4x32xf32>
    %cst = arith.constant dense<0.000000e+00> : vector<8x32xf32>
    %2 = tpu.matmul %0, %1, %cst {dimension_numbers = #tpu.dot_dimension_numbers<[1], [0], [0], [1], [0, 0, 1, 1], [], []>} : vector<8x4xf32>, vector<4x32xf32>, vector<8x32xf32> -> vector<8x32xf32>
    %c0_3 = arith.constant 0 : index
    %c0_4 = arith.constant 0 : index
    %3 = vector.load %arg1[%c0_3, %c0_4] : memref<8x32xf32, #tpu.memory_space<vmem>>, vector<8x32xf32>
    %4 = arith.subf %3, %2 : vector<8x32xf32>
    %c0_5 = arith.constant 0 : index
    %c0_6 = arith.constant 0 : index
    %5 = vector.load %arg4[%c0_5, %c0_6] : memref<8x32xf32, #tpu.memory_space<vmem>>, vector<8x32xf32>
    tpu.vector_store %arg4[%c0_5, %c0_6], %4 {strides = array<i32>} : memref<8x32xf32, #tpu.memory_space<vmem>>, vector<8x32xf32>,
    return
  }
  func.func @transform_0(%arg0: i32) -> (i32, i32) {
    %c0_i32 = arith.constant 0 : i32
    %c0_i32_0 = arith.constant 0 : i32
    return %arg0, %c0_i32 : i32, i32
  }
  func.func @transform_1(%arg0: i32) -> (i32, i32) {
    %c0_i32 = arith.constant 0 : i32
    %c0_i32_0 = arith.constant 0 : i32
    return %arg0, %c0_i32 : i32, i32
  }
  func.func @transform_2(%arg0: i32) -> (i32, i32) {
    %c0_i32 = arith.constant 0 : i32
    %c0_i32_0 = arith.constant 0 : i32
    %c0_i32_1 = arith.constant 0 : i32
    return %c0_i32, %c0_i32_0 : i32, i32
  }
  func.func @transform_3(%arg0: i32) -> (i32, i32) {
    %c0_i32 = arith.constant 0 : i32
    %c0_i32_0 = arith.constant 0 : i32
    return %arg0, %c0_i32 : i32, i32
  }
}

</mosaic_0001>

<bundles_post_ra>
// kernel: tpu_custom_call.1
= control target key start
LH: loop header
LB: loop body
LE: loop exit
PB: predicated region body
PF: predicated region fallthrough
CT: control target
= control target key end

     0   :  { %vm21_vm0 = vcmask 1043456   ;;  %v149_v2 = vmov 0.0   ;;  %vm150_vm1 = vmmov 0   ;;  %vm17_vm2 = vcmask 31744   ;;  %s193_s0 = inlined_call_operand.vmem [shape: f32[8,32], index: 0, kind: input, shape index: {}]   ;;  %s194_s1 = inlined_call_operand.vmem [shape: f32[8,4], index: 1, kind: input, shape index: {}]   ;;  %s195_s2 = inlined_call_operand.vmem [shape: f32[4,32], index: 2, kind: input, shape index: {}]   ;;  %s196_s3 = inlined_call_operand.hbm [shape: f32[8,32], index: 3, kind: output, shape index: {}]  }
   0x1   :  { %v16_v0 = vld [vmem:[%s195_s2] sm:$0xf]  ;;  %117 = vmatprep.subr.mxu0 %v149_v2  ;;  %119 = vmatprep.mubr.msk.f32.mxu0 %vm150_vm1, %v149_v2 }
   0x2   :  { %v15_v1 = vld [vmem:[%s194_s1] sm:$0xff] }
   0x3   :  { %8 = vsyncpa [#allocation3], 0  ;;  %118 = vmatpush3.msk.msra.mxu0 %vm21_vm0, %v16_v0  ;;  %v95_v3 = vld [vmem:[%s193_s0] sm:$0xff]  ;;  %s151_s18 = smov [#allocation2]   ;;  %vm97_vm3 = vcmask 261120  }
   0x4   :  { %120 = vmatmul.mubr.msk.f32.vlgmr.msra.gmra.mrb[0].mxu0 %vm17_vm2, %v15_v1  ;;  %s105_s19 = sshll.u32 %s151_s18, 4  ;;  %s106_s19 = int_to_ptr.vmem [resolvable:$true] %s105_s19 }
   0x5   :  { %s125_s1 = scalar_lea.vmem %s106_s19, 128  ;;  %p130_p1 = scmp.lt.s32.totalorder %s106_s19, %s106_s19 }
   0x6   :  { %p126_p0 = scmp.ne.s32.totalorder %s106_s19, %s125_s1  ;;  %p131_p2 = scmp.lt.s32.totalorder %s125_s1, %s125_s1 }
   0x8   :  { %p132_p3 = por %p131_p2, %p130_p1 }
   0xa   :  { %p133_p4 = pnand %p132_p3, %p126_p0 }
  0xd7   :  { %v91_v4 = vpop.f32.mrb[0].mxu0 }
  0xd8   :  { %v96_v5 = vsub.f32 %v95_v3, %v91_v4  ;;  %v121_v6 = vpop.f32.mrb[1].mxu0 }
  0xda   :  { %98 = vst.msk [vmem:[#allocation2] sm:$0xff] %vm97_vm3, %v96_v5 }
  0xdb   :  { %136 = shalt.err (!%p133_p4)
}
  0xdc   :  { %s137_s21 = scalar_lea.hbm %s196_s3, 128 }
  0xdd   :  { %p138_p5 = scmp.ne.s32.totalorder %s196_s3, %s137_s21  ;;  %p141_p6 = scmp.lt.u32.totalorder %s137_s21, %s196_s3 }
  0xdf   :  { %p143_p7 = pnand %p141_p6, %p138_p5 }
  0xe1   :  { %146 = shalt.err (!%p143_p7)
}
  0xe2   :  { %108 = dma.vmem_to_hbm [thread:$0]  %s106_s19, 128, %s196_s3, [#allocation3]  }
  0xe3   :  { %147 = dma.done.wait [#allocation3], 128  }
  0xe4   :  { %148 = vsyncadd [#allocation3], 4294967168 }
  0xe5   :  { %112 = vsyncpa [#allocation3], 1 }

</bundles_post_ra>
